<compile_context>
chip_gen: v7x
topology: tpu7x:2x2x1
jax: 0.10.0
libtpu: 0.0.40
codegen_flags: <defaults>
</compile_context>

<pallas_src>
import functools

import jax
import jax.numpy as jnp
from jax.experimental import pallas as pl
from jax.experimental.pallas import tpu as pltpu

LANES = 128
SUBLANES = 8
# 8192 rows x 128 lanes x 4 B = 4 MiB (f32) per input per grid step.
MAX_TILE_ROWS = 8192
# Leading "parallel" grid axis size: shards the reduction across the 2
# TensorCores on v7x; a serial outer loop elsewhere.
NUM_CORE_SPLITS = 2
# Below this many elements a plain XLA fusion beats pallas_call dispatch.
FAST_PATH_MAX_ELEMS = 512 * 1024

VMEM_LIMIT_BYTES = 32 * 1024 * 1024


def _round_up(x, m):
    return (x + m - 1) // m * m


def _mse_partial_kernel(x_ref, y_ref, out_ref, *, tile_rows, valid_rows,
                        blocks_per_split, mask_needed):
    """Accumulate per-lane partial sums of (x - y)^2 into this split's
    resident (8, 128) f32 output block.  Hot loop is VPU-only; the cross-lane
    reduction of the partials is a tiny XLA epilogue in the wrapper."""
    c = pl.program_id(0)   # core-split index ("parallel")
    i = pl.program_id(1)   # block index within the split ("arbitrary")

    @pl.when(i == 0)
    def _():
        out_ref[...] = jnp.zeros_like(out_ref)

    d = x_ref[...].astype(jnp.float32) - y_ref[...].astype(jnp.float32)
    sq = d * d

    def accumulate(vals):
        # (tile_rows, 128) -> (tile_rows//8, 8, 128) is layout-preserving;
        # the axis-0 sum is pure VPU adds (no cross-lane movement here).
        out_ref[...] += vals.reshape(-1, SUBLANES, LANES).sum(axis=0)

    if mask_needed:
        # Only overhanging (or clamped-duplicate) blocks pay for the mask.
        row_start = (c * blocks_per_split + i) * tile_rows

        @pl.when(row_start + tile_rows <= valid_rows)
        def _():
            accumulate(sq)

        @pl.when(row_start + tile_rows > valid_rows)
        def _():
            row = row_start + jax.lax.broadcasted_iota(jnp.int32, sq.shape, 0)
            accumulate(jnp.where(row < valid_rows, sq, 0.0))
    else:
        accumulate(sq)


def _mse_loss_pallas_impl(inputs: jax.Array, target: jax.Array) -> jax.Array:
    """MSE ("mean" reduction) with the sum-of-squares done in a Pallas kernel."""
    assert inputs.shape == target.shape, "input/target must have the same shape"
    n_elem = inputs.size
    itemsize = jnp.dtype(inputs.dtype).itemsize

    x_flat = inputs.reshape(-1)
    y_flat = target.reshape(-1)

    n_rem = n_elem % LANES
    n_main = n_elem - n_rem

    # <=127-element remainder reduced in XLA (avoids padding whole tensors).
    rem_sum = jnp.float32(0.0)
    if n_rem:
        dr = (x_flat[n_main:].astype(jnp.float32)
              - y_flat[n_main:].astype(jnp.float32))
        rem_sum = jnp.sum(dr * dr)

    if n_main == 0:
        return (rem_sum / jnp.float32(n_elem)).astype(jnp.float32)

    if n_rem:
        # Only taken for non-128-aligned element counts (rare for real
        # activation shapes); the aligned common case is reshape-only.
        x_flat = x_flat[:n_main]
        y_flat = y_flat[:n_main]

    rows = n_main // LANES
    x2 = x_flat.reshape(rows, LANES)   # contiguous -> free reshape
    y2 = y_flat.reshape(rows, LANES)

    # Sub-32-bit dtypes pack along sublanes: keep the block row count a
    # multiple of the packed tile (8 f32 / 16 bf16 / 32 int8-fp8).
    row_align = SUBLANES * max(1, 4 // itemsize)
    tile_rows = min(MAX_TILE_ROWS, _round_up(rows, row_align))

    if tile_rows > rows:
        # Only for inputs smaller than one tile: pad a handful of zero rows
        # (zeros contribute 0 to the squared sum).
        pad_rows = tile_rows - rows
        x2 = jnp.pad(x2, ((0, pad_rows), (0, 0)))
        y2 = jnp.pad(y2, ((0, pad_rows), (0, 0)))
        rows = tile_rows

    num_blocks = pl.cdiv(rows, tile_rows)
    num_splits = max(1, min(NUM_CORE_SPLITS, num_blocks))
    blocks_per_split = pl.cdiv(num_blocks, num_splits)
    # Masking is needed iff any logical block overhangs the valid rows
    # (partial last block, or a clamped duplicate block on an uneven split).
    mask_needed = (num_splits * blocks_per_split * tile_rows) != rows

    def in_index_map(c, i):
        # Clamp so overhanging/duplicate logical blocks stay in bounds; their
        # contribution is zeroed in-kernel via the row mask.
        return (jnp.minimum(c * blocks_per_split + i, num_blocks - 1), 0)

    kernel = functools.partial(
        _mse_partial_kernel,
        tile_rows=tile_rows,
        valid_rows=rows,
        blocks_per_split=blocks_per_split,
        mask_needed=mask_needed,
    )

    partials = pl.pallas_call(
        kernel,
        out_shape=jax.ShapeDtypeStruct((num_splits * SUBLANES, LANES),
                                       jnp.float32),
        grid_spec=pltpu.PrefetchScalarGridSpec(
            num_scalar_prefetch=0,
            grid=(num_splits, blocks_per_split),
            in_specs=[
                pl.BlockSpec((tile_rows, LANES), in_index_map),
                pl.BlockSpec((tile_rows, LANES), in_index_map),
            ],
            out_specs=pl.BlockSpec((SUBLANES, LANES), lambda c, i: (c, 0)),
        ),
        compiler_params=pltpu.CompilerParams(
            dimension_semantics=("parallel", "arbitrary"),
            vmem_limit_bytes=VMEM_LIMIT_BYTES,
        ),
        cost_estimate=pl.CostEstimate(
            flops=3 * n_main,
            transcendentals=0,
            bytes_accessed=2 * n_main * itemsize
                           + num_splits * SUBLANES * LANES * 4,
        ),
    )(x2, y2)

    sq_sum = jnp.sum(partials) + rem_sum
    # "mean" reduction: divide by the ORIGINAL element count.
    return (sq_sum / jnp.float32(n_elem)).astype(jnp.float32)


# Kernel path, always uses Pallas (exposed so the kernel can be exercised even
# on tiny inputs).
mse_loss_pallas = jax.jit(_mse_loss_pallas_impl)


@jax.jit
def mse_loss(inputs: jax.Array, target: jax.Array) -> jax.Array:
    """ILoss.forward(input, target) -> scalar loss (MSE, mean reduction)."""
    if inputs.size <= FAST_PATH_MAX_ELEMS:
        d = inputs.astype(jnp.float32) - target.astype(jnp.float32)
        return jnp.mean(d * d)
    return _mse_loss_pallas_impl(inputs, target)


if __name__ == "__main__":
    key = jax.random.PRNGKey(0)

    # Small NCHW shape consistent with a typical ILoss.forward call.
    k1, k2 = jax.random.split(key)
    x = jax.random.normal(k1, (2, 4, 16, 16), dtype=jnp.float32)
    t = jax.random.normal(k2, (2, 4, 16, 16), dtype=jnp.float32)

    loss = mse_loss_pallas(x, t)          # force the Pallas kernel path
    jax.block_until_ready(loss)
    ref = jnp.mean((x - t) ** 2)
    assert jnp.allclose(loss, ref, rtol=1e-4, atol=1e-6), (loss, ref)

    # Multi-block input: exercises the 2-way core split and the gated
    # tail-mask path (12000 rows -> 2 blocks of 8192, last one partial).
    k3, k4 = jax.random.split(k2)
    xb = jax.random.normal(k3, (3000, 512), dtype=jnp.float32)
    tb = jax.random.normal(k4, (3000, 512), dtype=jnp.float32)
    loss_b = mse_loss_pallas(xb, tb)
    jax.block_until_ready(loss_b)
    ref_b = jnp.mean((xb - tb) ** 2)
    assert jnp.allclose(loss_b, ref_b, rtol=1e-4, atol=1e-6), (loss_b, ref_b)

    # Non-128-aligned element count: kernel on aligned prefix + XLA remainder.
    k5, k6 = jax.random.split(k4)
    xu = jax.random.normal(k5, (7, 555), dtype=jnp.float32)
    tu = jax.random.normal(k6, (7, 555), dtype=jnp.float32)
    loss_u = mse_loss_pallas(xu, tu)
    jax.block_until_ready(loss_u)
    ref_u = jnp.mean((xu - tu) ** 2)
    assert jnp.allclose(loss_u, ref_u, rtol=1e-4, atol=1e-6), (loss_u, ref_u)

    # bf16 path: packed-sublane row alignment (16 rows per tile multiple).
    xh = x.astype(jnp.bfloat16)
    th = t.astype(jnp.bfloat16)
    loss_h = mse_loss_pallas(xh, th)
    jax.block_until_ready(loss_h)
    ref_h = jnp.mean((xh.astype(jnp.float32) - th.astype(jnp.float32)) ** 2)
    assert jnp.allclose(loss_h, ref_h, rtol=1e-2, atol=1e-3), (loss_h, ref_h)

    # Dispatcher (XLA fast path at this size) must agree too.
    loss_d = mse_loss(x, t)
    jax.block_until_ready(loss_d)
    assert jnp.allclose(loss_d, ref, rtol=1e-4, atol=1e-6), (loss_d, ref)

    print("KERNEL_OK")
</pallas_src>

<mosaic_0001>
module attributes {stable_mosaic.version = 11 : i64} {
  func.func @_mse_partial_kernel(%arg0: i32, %arg1: i32, %arg2: memref<16x128xf32, #tpu.memory_space<vmem>>, %arg3: memref<16x128xf32, #tpu.memory_space<vmem>>, %arg4: memref<8x128xf32, #tpu.memory_space<vmem>>) attributes {dimension_semantics = [#tpu.dimension_semantics<parallel>, #tpu.dimension_semantics<arbitrary>], iteration_bounds = array<i64: 1, 1>, scalar_prefetch = 0 : i64, scratch_operands = 0 : i64, tpu.core_type = #tpu.core_type<tc>, window_params = [{transform_indices = @transform_0, window_bounds = array<i64: 16, 128>}, {transform_indices = @transform_1, window_bounds = array<i64: 16, 128>}, {transform_indices = @transform_2, window_bounds = array<i64: 8, 128>}]} {
    %c0_i32 = arith.constant 0 : i32
    %0 = arith.cmpi eq, %arg1, %c0_i32 : i32
    %1 = arith.extui %0 : i1 to i32
    %c0_i32_0 = arith.constant 0 : i32
    %2 = arith.cmpi ne, %1, %c0_i32_0 : i32
    scf.if %2 {
      %cst_8 = arith.constant 0.000000e+00 : f32
      %12 = vector.broadcast %cst_8 : f32 to vector<8x128xf32>
      %c0_9 = arith.constant 0 : index
      %c0_10 = arith.constant 0 : index
      %13 = vector.load %arg4[%c0_9, %c0_10] : memref<8x128xf32, #tpu.memory_space<vmem>>, vector<8x128xf32>
      tpu.vector_store %arg4[%c0_9, %c0_10], %12 {strides = array<i32>} : memref<8x128xf32, #tpu.memory_space<vmem>>, vector<8x128xf32>,
    } else {
    }
    %c0 = arith.constant 0 : index
    %c0_1 = arith.constant 0 : index
    %3 = vector.load %arg2[%c0, %c0_1] : memref<16x128xf32, #tpu.memory_space<vmem>>, vector<16x128xf32>
    %c0_2 = arith.constant 0 : index
    %c0_3 = arith.constant 0 : index
    %4 = vector.load %arg3[%c0_2, %c0_3] : memref<16x128xf32, #tpu.memory_space<vmem>>, vector<16x128xf32>
    %5 = arith.subf %3, %4 : vector<16x128xf32>
    %6 = arith.mulf %5, %5 : vector<16x128xf32>
    %c0_4 = arith.constant 0 : index
    %c0_5 = arith.constant 0 : index
    %7 = vector.load %arg4[%c0_4, %c0_5] : memref<8x128xf32, #tpu.memory_space<vmem>>, vector<8x128xf32>
    %8 = vector.shape_cast %6 : vector<16x128xf32> to vector<2x8x128xf32>
    %cst = arith.constant dense<0.000000e+00> : vector<8x128xf32>
    %9 = vector.multi_reduction <add>, %8, %cst [0] : vector<2x8x128xf32> to vector<8x128xf32>
    %10 = arith.addf %7, %9 : vector<8x128xf32>
    %c0_6 = arith.constant 0 : index
    %c0_7 = arith.constant 0 : index
    %11 = vector.load %arg4[%c0_6, %c0_7] : memref<8x128xf32, #tpu.memory_space<vmem>>, vector<8x128xf32>
    tpu.vector_store %arg4[%c0_6, %c0_7], %10 {strides = array<i32>} : memref<8x128xf32, #tpu.memory_space<vmem>>, vector<8x128xf32>,
    return
  }
  func.func @transform_0(%arg0: i32, %arg1: i32) -> (i32, i32) {
    %c1_i32 = arith.constant 1 : i32
    %0 = arith.muli %arg0, %c1_i32 : i32
    %1 = arith.addi %0, %arg1 : i32
    %c0_i32 = arith.constant 0 : i32
    %2 = arith.minsi %1, %c0_i32 : i32
    %c0_i32_0 = arith.constant 0 : i32
    %c0_i32_1 = arith.constant 0 : i32
    return %2, %c0_i32_0 : i32, i32
  }
  func.func @transform_1(%arg0: i32, %arg1: i32) -> (i32, i32) {
    %c1_i32 = arith.constant 1 : i32
    %0 = arith.muli %arg0, %c1_i32 : i32
    %1 = arith.addi %0, %arg1 : i32
    %c0_i32 = arith.constant 0 : i32
    %2 = arith.minsi %1, %c0_i32 : i32
    %c0_i32_0 = arith.constant 0 : i32
    %c0_i32_1 = arith.constant 0 : i32
    return %2, %c0_i32_0 : i32, i32
  }
  func.func @transform_2(%arg0: i32, %arg1: i32) -> (i32, i32) {
    %c0_i32 = arith.constant 0 : i32
    %c0_i32_0 = arith.constant 0 : i32
    return %arg0, %c0_i32 : i32, i32
  }
}

</mosaic_0001>

<bundles_post_ra>
// kernel: _mse_loss_pallas_impl.1
= control target key start
LH: loop header
LB: loop body
LE: loop exit
PB: predicated region body
PF: predicated region fallthrough
CT: control target
= control target key end

     0   :  { %s139_s0 = inlined_call_operand.vmem [shape: f32[16,128], index: 0, kind: input, shape index: {}]   ;;  %s140_s1 = inlined_call_operand.vmem [shape: f32[16,128], index: 1, kind: input, shape index: {}]   ;;  %s141_s2 = inlined_call_operand.vmem [shape: f32[8,128], index: 2, kind: output, shape index: {}]  }
   0x1   :  { %v80_v0 = vld [vmem:[%s139_s0] sm:$0xff]  ;;  %v81_v1 = vld [vmem:[%s139_s0 + $0x8] sm:$0xff] }
   0x2   :  { %v82_v2 = vld [vmem:[%s140_s1] sm:$0xff]  ;;  %v83_v3 = vld [vmem:[%s140_s1 + $0x8] sm:$0xff] }
   0x3   :  { %v84_v4 = vsub.f32 %v80_v0, %v82_v2  ;;  %v85_v5 = vsub.f32 %v81_v1, %v83_v3 }
   0x5   :  { %v86_v6 = vmul.f32 %v84_v4, %v84_v4  ;;  %v87_v7 = vmul.f32 %v85_v5, %v85_v5 }
   0x7   :  { %v89_v8 = vadd.f32 %v87_v7, %v86_v6 }
   0x9   :  { %91 = vst [vmem:[%s141_s2] sm:$0xff] %v89_v8 }

</bundles_post_ra>
